<compile_context>
chip_gen: v7x
topology: tpu7x:2x2x1
jax: 0.10.0
libtpu: 0.0.40
codegen_flags: <defaults>
</compile_context>

<pallas_src>
import math
import jax
import jax.numpy as jnp
from jax.experimental import pallas as pl
from jax.experimental.pallas import tpu as pltpu


def _gelu_exact(x):
    # PyTorch nn.GELU() default = exact erf-based GELU.
    return 0.5 * x * (1.0 + jax.lax.erf(x / jnp.sqrt(2.0).astype(x.dtype)))


def state_embedding_kernel(s_ref, w1_ref, b1_ref, w2_ref, b2_ref, o_ref):
    # Fully fused in VMEM: two MXU matmuls + exact GELU, f32 accumulation.
    s = s_ref[...]                                                  # (TB, Kp)
    h = jnp.dot(s, w1_ref[...], preferred_element_type=jnp.float32)
    h = _gelu_exact(h + b1_ref[...])                                # (TB, Hp)
    o = jnp.dot(h, w2_ref[...], preferred_element_type=jnp.float32)
    o_ref[...] = _gelu_exact(o + b2_ref[...]).astype(o_ref.dtype)   # (TB, Ep)


def _round_up(x, m):
    return (x + m - 1) // m * m


def state_embedding(s, w1, b1, w2, b2, *, max_tile_b=256):
    """s: (B, s_dim) f32; w1: (s_dim, H); b1: (1, H); w2: (H, E); b2: (1, E).

    Weights are stored [in_features, out_features] (transposed from PyTorch's
    nn.Linear [out, in]) so the kernel does plain `x @ W + b` on the MXU.
    """
    B, s_dim = s.shape
    H = w1.shape[1]
    E = w2.shape[1]

    # Lane-dense padding of all feature dims (unmasked vld/vst, full MXU feed).
    Kp = _round_up(s_dim, 128)
    Hp = _round_up(H, 128)
    Ep = _round_up(E, 128)

    # Batch tile: single grid step for small batches (no pipeline overhead),
    # MXU-sized 256-row tiles for large batches.  Ragged batches are handled
    # by zero-padding rows (sliced off after the call), not by asserts.
    tile_b = min(_round_up(max(B, 1), 8), max_tile_b)
    Bp = _round_up(B, tile_b)

    s_p = jnp.pad(s, ((0, Bp - B), (0, Kp - s_dim)))
    w1_p = jnp.pad(w1, ((0, Kp - s_dim), (0, Hp - H)))
    b1_p = jnp.pad(b1, ((0, 0), (0, Hp - H)))
    w2_p = jnp.pad(w2, ((0, Hp - H), (0, Ep - E)))
    b2_p = jnp.pad(b2, ((0, 0), (0, Ep - E)))

    out_p = pl.pallas_call(
        state_embedding_kernel,
        out_shape=jax.ShapeDtypeStruct((Bp, Ep), s.dtype),
        grid_spec=pltpu.PrefetchScalarGridSpec(
            num_scalar_prefetch=0,
            grid=(Bp // tile_b,),
            in_specs=[
                pl.BlockSpec((tile_b, Kp), lambda i: (i, 0)),  # activations, batch-tiled
                pl.BlockSpec((Kp, Hp), lambda i: (0, 0)),       # W1 resident
                pl.BlockSpec((1, Hp), lambda i: (0, 0)),        # b1 resident
                pl.BlockSpec((Hp, Ep), lambda i: (0, 0)),       # W2 resident
                pl.BlockSpec((1, Ep), lambda i: (0, 0)),        # b2 resident
            ],
            out_specs=pl.BlockSpec((tile_b, Ep), lambda i: (i, 0)),
        ),
        compiler_params=pltpu.CompilerParams(
            dimension_semantics=("parallel",),
            vmem_limit_bytes=64 * 1024 * 1024,  # safe on v7x's 64 MiB VMEM
        ),
    )(s_p, w1_p, b1_p, w2_p, b2_p)

    # Strip batch / lane padding.
    return out_p[:B, :E]


def _init_linear(key, fan_in, fan_out):
    # Deterministic init mimicking nn.Linear's Kaiming-uniform + bias uniform.
    kw, kb = jax.random.split(key)
    bound_w = 1.0 / math.sqrt(fan_in)
    w = jax.random.uniform(kw, (fan_in, fan_out), jnp.float32, -bound_w, bound_w)
    b = jax.random.uniform(kb, (1, fan_out), jnp.float32, -bound_w, bound_w)
    return w, b


if __name__ == "__main__":
    # StateEmbedding(s_dim=32, hidden_dim=64, s_emb_dim=64)
    B, S_DIM, HIDDEN, S_EMB = 16, 32, 64, 64

    key = jax.random.PRNGKey(0)
    k_x, k_l1, k_l2 = jax.random.split(key, 3)

    s = jax.random.normal(k_x, (B, S_DIM), jnp.float32)
    w1, b1 = _init_linear(k_l1, S_DIM, HIDDEN)
    w2, b2 = _init_linear(k_l2, HIDDEN, S_EMB)

    out = state_embedding(s, w1, b1, w2, b2)
    out = jax.block_until_ready(out)

    # Reference check in plain JAX (exact-GELU MLP).
    ref = jax.nn.gelu(s @ w1 + b1, approximate=False)
    ref = jax.nn.gelu(ref @ w2 + b2, approximate=False)
    assert out.shape == (B, S_EMB)
    assert jnp.allclose(out, ref, atol=1e-5, rtol=1e-5)

    print("KERNEL_OK")
</pallas_src>

<mosaic_0001>
module attributes {stable_mosaic.version = 11 : i64} {
  func.func @state_embedding_kernel(%arg0: i32, %arg1: memref<16x128xf32, #tpu.memory_space<vmem>>, %arg2: memref<128x128xf32, #tpu.memory_space<vmem>>, %arg3: memref<1x128xf32, #tpu.memory_space<vmem>>, %arg4: memref<128x128xf32, #tpu.memory_space<vmem>>, %arg5: memref<1x128xf32, #tpu.memory_space<vmem>>, %arg6: memref<16x128xf32, #tpu.memory_space<vmem>>) attributes {dimension_semantics = [#tpu.dimension_semantics<parallel>], iteration_bounds = array<i64: 1>, scalar_prefetch = 0 : i64, scratch_operands = 0 : i64, tpu.core_type = #tpu.core_type<tc>, window_params = [{transform_indices = @transform_0, window_bounds = array<i64: 16, 128>}, {pipeline_mode = #tpu.pipeline_mode<synchronous>, transform_indices = @transform_1, window_bounds = array<i64: 128, 128>}, {pipeline_mode = #tpu.pipeline_mode<synchronous>, transform_indices = @transform_2, window_bounds = array<i64: 1, 128>}, {pipeline_mode = #tpu.pipeline_mode<synchronous>, transform_indices = @transform_3, window_bounds = array<i64: 128, 128>}, {pipeline_mode = #tpu.pipeline_mode<synchronous>, transform_indices = @transform_4, window_bounds = array<i64: 1, 128>}, {transform_indices = @transform_5, window_bounds = array<i64: 16, 128>}]} {
    %c0 = arith.constant 0 : index
    %c0_0 = arith.constant 0 : index
    %0 = vector.load %arg1[%c0, %c0_0] : memref<16x128xf32, #tpu.memory_space<vmem>>, vector<16x128xf32>
    %c0_1 = arith.constant 0 : index
    %c0_2 = arith.constant 0 : index
    %1 = vector.load %arg2[%c0_1, %c0_2] : memref<128x128xf32, #tpu.memory_space<vmem>>, vector<128x128xf32>
    %cst = arith.constant dense<0.000000e+00> : vector<16x128xf32>
    %2 = tpu.matmul %0, %1, %cst {dimension_numbers = #tpu.dot_dimension_numbers<[1], [0], [0], [1], [0, 0, 1, 1], [], []>} : vector<16x128xf32>, vector<128x128xf32>, vector<16x128xf32> -> vector<16x128xf32>
    %c0_3 = arith.constant 0 : index
    %c0_4 = arith.constant 0 : index
    %3 = vector.load %arg3[%c0_3, %c0_4] : memref<1x128xf32, #tpu.memory_space<vmem>>, vector<1x128xf32>
    %4 = vector.broadcast %3 : vector<1x128xf32> to vector<16x128xf32>
    %5 = arith.addf %2, %4 : vector<16x128xf32>
    %cst_5 = arith.constant 5.000000e-01 : f32
    %6 = vector.broadcast %cst_5 : f32 to vector<16x128xf32>
    %7 = arith.mulf %6, %5 : vector<16x128xf32>
    %cst_6 = arith.constant 2.000000e+00 : f32
    %8 = math.sqrt %cst_6 : f32
    %9 = vector.broadcast %8 : f32 to vector<16x128xf32>
    %10 = arith.divf %5, %9 : vector<16x128xf32>
    %11 = math.erf %10 : vector<16x128xf32>
    %cst_7 = arith.constant 1.000000e+00 : f32
    %12 = vector.broadcast %cst_7 : f32 to vector<16x128xf32>
    %13 = arith.addf %12, %11 : vector<16x128xf32>
    %14 = arith.mulf %7, %13 : vector<16x128xf32>
    %c0_8 = arith.constant 0 : index
    %c0_9 = arith.constant 0 : index
    %15 = vector.load %arg4[%c0_8, %c0_9] : memref<128x128xf32, #tpu.memory_space<vmem>>, vector<128x128xf32>
    %cst_10 = arith.constant dense<0.000000e+00> : vector<16x128xf32>
    %16 = tpu.matmul %14, %15, %cst_10 {dimension_numbers = #tpu.dot_dimension_numbers<[1], [0], [0], [1], [0, 0, 1, 1], [], []>} : vector<16x128xf32>, vector<128x128xf32>, vector<16x128xf32> -> vector<16x128xf32>
    %c0_11 = arith.constant 0 : index
    %c0_12 = arith.constant 0 : index
    %17 = vector.load %arg5[%c0_11, %c0_12] : memref<1x128xf32, #tpu.memory_space<vmem>>, vector<1x128xf32>
    %18 = vector.broadcast %17 : vector<1x128xf32> to vector<16x128xf32>
    %19 = arith.addf %16, %18 : vector<16x128xf32>
    %cst_13 = arith.constant 5.000000e-01 : f32
    %20 = vector.broadcast %cst_13 : f32 to vector<16x128xf32>
    %21 = arith.mulf %20, %19 : vector<16x128xf32>
    %cst_14 = arith.constant 2.000000e+00 : f32
    %22 = math.sqrt %cst_14 : f32
    %23 = vector.broadcast %22 : f32 to vector<16x128xf32>
    %24 = arith.divf %19, %23 : vector<16x128xf32>
    %25 = math.erf %24 : vector<16x128xf32>
    %cst_15 = arith.constant 1.000000e+00 : f32
    %26 = vector.broadcast %cst_15 : f32 to vector<16x128xf32>
    %27 = arith.addf %26, %25 : vector<16x128xf32>
    %28 = arith.mulf %21, %27 : vector<16x128xf32>
    %c0_16 = arith.constant 0 : index
    %c0_17 = arith.constant 0 : index
    %29 = vector.load %arg6[%c0_16, %c0_17] : memref<16x128xf32, #tpu.memory_space<vmem>>, vector<16x128xf32>
    tpu.vector_store %arg6[%c0_16, %c0_17], %28 {strides = array<i32>} : memref<16x128xf32, #tpu.memory_space<vmem>>, vector<16x128xf32>,
    return
  }
  func.func @transform_0(%arg0: i32) -> (i32, i32) {
    %c0_i32 = arith.constant 0 : i32
    %c0_i32_0 = arith.constant 0 : i32
    return %arg0, %c0_i32 : i32, i32
  }
  func.func @transform_1(%arg0: i32) -> (i32, i32) {
    %c0_i32 = arith.constant 0 : i32
    %c0_i32_0 = arith.constant 0 : i32
    %c0_i32_1 = arith.constant 0 : i32
    return %c0_i32, %c0_i32_0 : i32, i32
  }
  func.func @transform_2(%arg0: i32) -> (i32, i32) {
    %c0_i32 = arith.constant 0 : i32
    %c0_i32_0 = arith.constant 0 : i32
    %c0_i32_1 = arith.constant 0 : i32
    return %c0_i32, %c0_i32_0 : i32, i32
  }
  func.func @transform_3(%arg0: i32) -> (i32, i32) {
    %c0_i32 = arith.constant 0 : i32
    %c0_i32_0 = arith.constant 0 : i32
    %c0_i32_1 = arith.constant 0 : i32
    return %c0_i32, %c0_i32_0 : i32, i32
  }
  func.func @transform_4(%arg0: i32) -> (i32, i32) {
    %c0_i32 = arith.constant 0 : i32
    %c0_i32_0 = arith.constant 0 : i32
    %c0_i32_1 = arith.constant 0 : i32
    return %c0_i32, %c0_i32_0 : i32, i32
  }
  func.func @transform_5(%arg0: i32) -> (i32, i32) {
    %c0_i32 = arith.constant 0 : i32
    %c0_i32_0 = arith.constant 0 : i32
    return %arg0, %c0_i32 : i32, i32
  }
}

</mosaic_0001>

<bundles_post_ra>
// kernel: tpu_custom_call.1
= control target key start
LH: loop header
LB: loop body
LE: loop exit
PB: predicated region body
PF: predicated region fallthrough
CT: control target
= control target key end

     0   :  { %10 = vsyncpa [#allocation3], 0  ;;  %s782_s0 = inlined_call_operand.hbm [shape: f32[16,128], index: 0, kind: input, shape index: {}]   ;;  %s783_s1 = inlined_call_operand.hbm [shape: f32[128,128], index: 1, kind: input, shape index: {}]   ;;  %s784_s2 = inlined_call_operand.hbm [shape: f32[1,128], index: 2, kind: input, shape index: {}]   ;;  %s785_s3 = inlined_call_operand.hbm [shape: f32[128,128], index: 3, kind: input, shape index: {}]   ;;  %s786_s4 = inlined_call_operand.hbm [shape: f32[1,128], index: 4, kind: input, shape index: {}]   ;;  %s787_s5 = inlined_call_operand.hbm [shape: f32[16,128], index: 5, kind: output, shape index: {}]  }
   0x1   :  { %11 = vsyncpa [#allocation6], 0 }
   0x2   :  { %12 = vsyncpa [#allocation9], 0 }
   0x3   :  { %13 = vsyncpa [#allocation4], 0  ;;  %s653_s18 = smov [#allocation5]   ;;  %s654_s20 = smov [#allocation8]  }
   0x4   :  { %s31_s19 = sshll.u32 %s653_s18, 4  ;;  %s53_s21 = sshll.u32 %s654_s20, 4  ;;  %s32_s19 = int_to_ptr.vmem [resolvable:$true] %s31_s19  ;;  %s691_s21 = int_to_ptr.vmem [resolvable:$true] %s53_s21 }
   0x5   :  { %s513_s24 = scalar_lea.hbm %s783_s1, 2048 }
   0x6   :  { %p514_p0 = scmp.ne.s32.totalorder %s783_s1, %s513_s24  ;;  %p517_p1 = scmp.lt.u32.totalorder %s513_s24, %s783_s1 }
   0x8   :  { %p519_p2 = pnand %p517_p1, %p514_p0 }
   0xa   :  { %522 = shalt.err (!%p519_p2)
}
   0xb   :  { %s523_s29 = scalar_lea.vmem %s32_s19, 2048  ;;  %p528_p4 = scmp.lt.s32.totalorder %s32_s19, %s32_s19 }
   0xc   :  { %p524_p3 = scmp.ne.s32.totalorder %s32_s19, %s523_s29  ;;  %p529_p5 = scmp.lt.s32.totalorder %s523_s29, %s523_s29 }
   0xe   :  { %p530_p6 = por %p529_p5, %p528_p4 }
  0x10   :  { %p531_p7 = pnand %p530_p6, %p524_p3 }
  0x12   :  { %534 = shalt.err (!%p531_p7)
}
  0x13   :  { %s655_s30 = smov 128   ;;  %s656_s6 = smov 8  }
  0x14   :  { %37 = dma.hbm_to_vmem [thread:$0]  %s783_s1, 2048, %s32_s19, [#allocation6], %s655_s30, %s655_s30, %s656_s6  }
  0x15   :  { %s535_s11 = scalar_lea.hbm %s785_s3, 2048 }
  0x16   :  { %p536_p8 = scmp.ne.s32.totalorder %s785_s3, %s535_s11  ;;  %p539_p9 = scmp.lt.u32.totalorder %s535_s11, %s785_s3 }
  0x18   :  { %p541_p10 = pnand %p539_p9, %p536_p8 }
  0x1a   :  { %544 = shalt.err (!%p541_p10)
}
  0x1b   :  { %s545_s16 = scalar_lea.vmem %s691_s21, 2048  ;;  %p550_p12 = scmp.lt.s32.totalorder %s691_s21, %s691_s21 }
  0x1c   :  { %p546_p11 = scmp.ne.s32.totalorder %s691_s21, %s545_s16  ;;  %p551_p13 = scmp.lt.s32.totalorder %s545_s16, %s545_s16 }
  0x1e   :  { %p552_p0 = por %p551_p13, %p550_p12 }
  0x20   :  { %p553_p1 = pnand %p552_p0, %p546_p11 }
  0x22   :  { %556 = shalt.err (!%p553_p1)
}
  0x23   :  { %59 = dma.hbm_to_vmem [thread:$0]  %s785_s3, 2048, %s691_s21, [#allocation9], %s655_s30, %s655_s30, %s656_s6  }
  0x24   :  { %s657_s18 = smov [#allocation2]   ;;  %s658_s20 = smov [#allocation7]  }
  0x25   :  { %s19_s19 = sshll.u32 %s657_s18, 4  ;;  %s44_s22 = sshll.u32 %s658_s20, 4  ;;  %s20_s19 = int_to_ptr.vmem [resolvable:$true] %s19_s19  ;;  %s45_s22 = int_to_ptr.vmem [resolvable:$true] %s44_s22 }
  0x26   :  { %s557_s25 = scalar_lea.hbm %s782_s0, 256 }
  0x27   :  { %p558_p2 = scmp.ne.s32.totalorder %s782_s0, %s557_s25  ;;  %p561_p3 = scmp.lt.u32.totalorder %s557_s25, %s782_s0 }
  0x29   :  { %p563_p4 = pnand %p561_p3, %p558_p2 }
  0x2b   :  { %566 = shalt.err (!%p563_p4)
}
  0x2c   :  { %s567_s3 = scalar_lea.vmem %s20_s19, 256  ;;  %p572_p6 = scmp.lt.s32.totalorder %s20_s19, %s20_s19 }
  0x2d   :  { %p568_p5 = scmp.ne.s32.totalorder %s20_s19, %s567_s3  ;;  %p573_p7 = scmp.lt.s32.totalorder %s567_s3, %s567_s3 }
  0x2f   :  { %p574_p8 = por %p573_p7, %p572_p6 }
  0x31   :  { %p575_p9 = pnand %p574_p8, %p568_p5 }
  0x33   :  { %578 = shalt.err (!%p575_p9)
}
  0x34   :  { %25 = dma.hbm_to_vmem [thread:$0]  %s782_s0, 256, %s20_s19, [#allocation3], %s655_s30, %s655_s30, %s656_s6  }
  0x35   :  { %s579_s10 = scalar_lea.hbm %s784_s2, 16 }
  0x36   :  { %p580_p10 = scmp.ne.s32.totalorder %s784_s2, %s579_s10  ;;  %p583_p11 = scmp.lt.u32.totalorder %s579_s10, %s784_s2 }
  0x38   :  { %p585_p12 = pnand %p583_p11, %p580_p10 }
  0x3a   :  { %588 = shalt.err (!%p585_p12)
}
  0x3b   :  { %s589_s15 = scalar_lea.vmem %s45_s22, 16  ;;  %s593_s16 = scalar_lea.vmem %s45_s22, 32 }
  0x3c   :  { %p590_p13 = scmp.ne.s32.totalorder %s45_s22, %s589_s15  ;;  %p594_p0 = scmp.lt.s32.totalorder %s45_s22, %s45_s22 }
  0x3d   :  { %p595_p1 = scmp.lt.s32.totalorder %s593_s16, %s589_s15 }
  0x3f   :  { %p596_p2 = por %p595_p1, %p594_p0 }
  0x41   :  { %p597_p3 = pnand %p596_p2, %p590_p13 }
  0x43   :  { %600 = shalt.err (!%p597_p3)
}
  0x44   :  { %47 = dma.hbm_to_vmem [thread:$0]  %s784_s2, 16, %s45_s22, [#allocation6]  }
  0x45   :  { %s659_s17 = smov [#allocation10]   ;;  %s601_s23 = scalar_lea.hbm %s786_s4, 16 }
  0x46   :  { %s66_s18 = sshll.u32 %s659_s17, 4  ;;  %p602_p4 = scmp.ne.s32.totalorder %s786_s4, %s601_s23  ;;  %s67_s18 = int_to_ptr.vmem [resolvable:$true] %s66_s18 }
  0x47   :  { %p605_p5 = scmp.lt.u32.totalorder %s601_s23, %s786_s4 }
  0x49   :  { %p607_p6 = pnand %p605_p5, %p602_p4 }
  0x4b   :  { %610 = shalt.err (!%p607_p6)
}
  0x4c   :  { %s611_s28 = scalar_lea.vmem %s67_s18, 16  ;;  %s615_s2 = scalar_lea.vmem %s67_s18, 32 }
  0x4d   :  { %p612_p7 = scmp.ne.s32.totalorder %s67_s18, %s611_s28  ;;  %p616_p8 = scmp.lt.s32.totalorder %s67_s18, %s67_s18 }
  0x4e   :  { %p617_p9 = scmp.lt.s32.totalorder %s615_s2, %s611_s28 }
  0x50   :  { %p618_p10 = por %p617_p9, %p616_p8 }
  0x52   :  { %p619_p11 = pnand %p618_p10, %p612_p7 }
  0x54   :  { %622 = shalt.err (!%p619_p11)
}
  0x55   :  { %69 = dma.hbm_to_vmem [thread:$0]  %s786_s4, 16, %s67_s18, [#allocation9]  }
  0x56   :  { %645 = dma.done.wait [#allocation3], 256  }
  0x57   :  { %646 = vsyncadd [#allocation3], 4294967040 }
  0x58   :  { %647 = dma.done.wait [#allocation6], 2064  }
  0x59   :  { %648 = vsyncadd [#allocation6], 4294965232 }
  0x5a   :  { %649 = dma.done.wait [#allocation9], 2064  }
  0x5b   :  { %650 = vsyncadd [#allocation9], 4294965232  ;;  %v87_v0 = vld [vmem:[#allocation5] sm:$0xff]  ;;  %v88_v1 = vld [vmem:[#allocation5 + $0x8] sm:$0xff]  ;;  %s660_s4 = smov [#allocation11]  }
  0x5c   :  { %v89_v2 = vld [vmem:[#allocation5 + $0x10] sm:$0xff]  ;;  %v433_v3 = vpack.c.bf16 %v88_v1, %v87_v0  ;;  %v90_v4 = vld [vmem:[#allocation5 + $0x18] sm:$0xff]  ;;  %v91_v6 = vld [vmem:[#allocation5 + $0x20] sm:$0xff]  ;;  %s311_s3 = sshll.u32 %s660_s4, 4  ;;  %s312_s3 = int_to_ptr.vmem [resolvable:$true] %s311_s3 }
  0x5d   :  { %v437_v5 = vpack.c.bf16 %v90_v4, %v89_v2  ;;  %v92_v7 = vld [vmem:[#allocation5 + $0x28] sm:$0xff]  ;;  %v93_v9 = vld [vmem:[#allocation5 + $0x30] sm:$0xff]  ;;  %v94_v10 = vld [vmem:[#allocation5 + $0x38] sm:$0xff]  ;;  %s623_s21 = scalar_lea.vmem %s312_s3, 256  ;;  %p628_p13 = scmp.lt.s32.totalorder %s312_s3, %s312_s3 }
  0x5e   :  { %434 = vmatprep.subr.bf16.mxu0 %v433_v3  ;;  %v441_v8 = vpack.c.bf16 %v92_v7, %v91_v6  ;;  %v85_v11 = vld [vmem:[#allocation2] sm:$0xff]  ;;  %v196_v12 = vld [vmem:[#allocation8] sm:$0xff]  ;;  %v199_v16 = vld [vmem:[#allocation8 + $0x18] sm:$0xff]  ;;  %v445_v20 = vpack.c.bf16 %v94_v10, %v93_v9  ;;  %p624_p12 = scmp.ne.s32.totalorder %s312_s3, %s623_s21  ;;  %p629_p0 = scmp.lt.s32.totalorder %s623_s21, %s623_s21 }
  0x5f   :  { %436 = vmatpush3.bf16.msra.mxu0 %v433_v3  ;;  %395 = vmatprep.mubr.f32.mxu0 %v85_v11  ;;  %v197_v13 = vld [vmem:[#allocation8 + $0x8] sm:$0xff]  ;;  %v198_v14 = vld [vmem:[#allocation8 + $0x10] sm:$0xff]  ;;  %v200_v18 = vld [vmem:[#allocation8 + $0x20] sm:$0xff] }
  0x60   :  { %438 = vmatprep.subr.bf16.mxu0 %v437_v5  ;;  %v465_v15 = vpack.c.bf16 %v197_v13, %v196_v12  ;;  %v469_v17 = vpack.c.bf16 %v199_v16, %v198_v14  ;;  %v201_v19 = vld [vmem:[#allocation8 + $0x28] sm:$0xff]  ;;  %v95_v21 = vld [vmem:[#allocation5 + $0x40] sm:$0xff]  ;;  %v98_v26 = vld [vmem:[#allocation5 + $0x58] sm:$0xff]  ;;  %p630_p1 = por %p629_p0, %p628_p13 }
  0x61   :  { %v96_v22 = vld [vmem:[#allocation5 + $0x48] sm:$0xff]  ;;  %v473_v23 = vpack.c.bf16 %v201_v19, %v200_v18  ;;  %v97_v25 = vld [vmem:[#allocation5 + $0x50] sm:$0xff]  ;;  %v99_v28 = vld [vmem:[#allocation5 + $0x60] sm:$0xff] }
  0x62   :  { %466 = vmatprep.subr.bf16.mxu1 %v465_v15  ;;  %v449_v24 = vpack.c.bf16 %v96_v22, %v95_v21  ;;  %v453_v27 = vpack.c.bf16 %v98_v26, %v97_v25  ;;  %v100_v29 = vld [vmem:[#allocation5 + $0x68] sm:$0xff]  ;;  %v101_v31 = vld [vmem:[#allocation5 + $0x70] sm:$0xff]  ;;  %v102_v32 = vld [vmem:[#allocation5 + $0x78] sm:$0xff]  ;;  %p631_p2 = pnand %p630_p1, %p624_p12 }
  0x63   :  { %440 = vmatpush3.bf16.msra.mxu0 %v437_v5  ;;  %468 = vmatpush3.bf16.msra.mxu1 %v465_v15  ;;  %v457_v30 = vpack.c.bf16 %v100_v29, %v99_v28  ;;  %v461_v33 = vpack.c.bf16 %v102_v32, %v101_v31  ;;  %v86_v34 = vld [vmem:[#allocation2 + $0x8] sm:$0xff]  ;;  %v204_v38 = vld [vmem:[#allocation8 + $0x40] sm:$0xff]  ;;  %v205_v39 = vld [vmem:[#allocation8 + $0x48] sm:$0xff] }
  0x64   :  { %442 = vmatprep.subr.bf16.mxu0 %v441_v8  ;;  %470 = vmatprep.subr.bf16.mxu1 %v469_v17  ;;  %v202_v35 = vld [vmem:[#allocation8 + $0x30] sm:$0xff]  ;;  %v203_v36 = vld [vmem:[#allocation8 + $0x38] sm:$0xff]  ;;  %v481_v40 = vpack.c.bf16 %v205_v39, %v204_v38  ;;  %v208_v44 = vld [vmem:[#allocation8 + $0x60] sm:$0xff] }
  0x65   :  { %v477_v37 = vpack.c.bf16 %v203_v36, %v202_v35  ;;  %v206_v41 = vld [vmem:[#allocation8 + $0x50] sm:$0xff]  ;;  %v207_v42 = vld [vmem:[#allocation8 + $0x58] sm:$0xff]  ;;  %v209_v45 = vld [vmem:[#allocation8 + $0x68] sm:$0xff] }
  0x66   :  { %v485_v43 = vpack.c.bf16 %v207_v42, %v206_v41  ;;  %v489_v46 = vpack.c.bf16 %v209_v45, %v208_v44  ;;  %v210_v47 = vld [vmem:[#allocation8 + $0x70] sm:$0xff]  ;;  %v211_v48 = vld [vmem:[#allocation8 + $0x78] sm:$0xff]  ;;  %v326_v1 = vld [vmem:[#allocation10] ss:$0 sm:$0xff] }
  0x67   :  { %444 = vmatpush3.bf16.msra.mxu0 %v441_v8  ;;  %472 = vmatpush3.bf16.msra.mxu1 %v469_v17  ;;  %v493_v49 = vpack.c.bf16 %v211_v48, %v210_v47  ;;  %v325_v50 = vld [vmem:[#allocation7] ss:$0 sm:$0xff] }
  0x68   :  { %446 = vmatprep.subr.bf16.mxu0 %v445_v20  ;;  %474 = vmatprep.subr.bf16.mxu1 %v473_v23 }
  0x6b   :  { %448 = vmatpush3.bf16.msra.mxu0 %v445_v20  ;;  %476 = vmatpush3.bf16.msra.mxu1 %v473_v23 }
  0x6c   :  { %450 = vmatprep.subr.bf16.mxu0 %v449_v24  ;;  %478 = vmatprep.subr.bf16.mxu1 %v477_v37 }
  0x6f   :  { %452 = vmatpush3.bf16.msra.mxu0 %v449_v24  ;;  %480 = vmatpush3.bf16.msra.mxu1 %v477_v37 }
  0x70   :  { %454 = vmatprep.subr.bf16.mxu0 %v453_v27  ;;  %482 = vmatprep.subr.bf16.mxu1 %v481_v40 }
  0x73   :  { %456 = vmatpush3.bf16.msra.mxu0 %v453_v27  ;;  %484 = vmatpush3.bf16.msra.mxu1 %v481_v40 }
  0x74   :  { %458 = vmatprep.subr.bf16.mxu0 %v457_v30  ;;  %486 = vmatprep.subr.bf16.mxu1 %v485_v43 }
  0x77   :  { %460 = vmatpush3.bf16.msra.mxu0 %v457_v30  ;;  %488 = vmatpush3.bf16.msra.mxu1 %v485_v43 }
  0x78   :  { %462 = vmatprep.subr.bf16.mxu0 %v461_v33  ;;  %490 = vmatprep.subr.bf16.mxu1 %v489_v46 }
  0x7b   :  { %464 = vmatpush3.bf16.msra.mxu0 %v461_v33  ;;  %492 = vmatpush3.bf16.msra.mxu1 %v489_v46 }
  0x7c   :  { %494 = vmatprep.subr.bf16.mxu1 %v493_v49 }
  0x7e   :  { %396 = vmatmul.mubr.f32.vlgmr.msra.gmra.mrb[0].mxu0 %v86_v34 }
  0x7f   :  { %496 = vmatpush3.bf16.msra.mxu1 %v493_v49 }
 0x151   :  { %v397_v51 = vpop.f32.mrb[0].mxu0 }
 0x152   :  { %v182_v52 = vadd.f32 %v397_v51, %v325_v50  ;;  %v176_v53 = vpop.f32.mrb[1].mxu0 }
 0x153   :  { %v177_v54 = vadd.f32 %v325_v50, %v176_v53 }
 0x154   :  { %v189_v55 = vmul.f32 0.70710677, %v182_v52  ;;  %v186_v62 = vmul.f32 0.5, %v182_v52 }
 0x155   :  { %v188_v56 = vmul.f32 0.70710677, %v177_v54  ;;  %v185_v60 = vmul.f32 0.5, %v177_v54 }
 0x156   :  { %505 = verf.f32 %v189_v55 }
 0x157   :  { %507 = verf.f32 %v188_v56 }
 0x160   :  { %v506_v57 = vpop.eup %505 }
 0x161   :  { %v508_v58 = vpop.eup %507  ;;  %v193_v59 = vadd.f32 1.0, %v506_v57 }
 0x162   :  { %v192_v61 = vadd.f32 1.0, %v508_v58 }
 0x163   :  { %v195_v0 = vmul.f32 %v193_v59, %v186_v62 }
 0x164   :  { %v194_v63 = vmul.f32 %v192_v61, %v185_v60 }
 0x166   :  { %430 = vmatprep.mubr.f32.mxu1 %v194_v63 }
 0x167   :  { %431 = vmatmul.mubr.f32.vlgmr.msra.gmra.mrb[0].mxu1 %v195_v0 }
 0x23a   :  { %v432_v2 = vpop.f32.mrb[0].mxu1 }
 0x23b   :  { %v291_v3 = vadd.f32 %v432_v2, %v326_v1  ;;  %v285_v4 = vpop.f32.mrb[1].mxu1 }
 0x23c   :  { %v286_v5 = vadd.f32 %v326_v1, %v285_v4 }
 0x23d   :  { %v297_v6 = vmul.f32 0.70710677, %v291_v3  ;;  %v295_v10 = vmul.f32 0.5, %v291_v3 }
 0x23e   :  { %v296_v7 = vmul.f32 0.70710677, %v286_v5  ;;  %v294_v12 = vmul.f32 0.5, %v286_v5 }
 0x23f   :  { %509 = verf.f32 %v297_v6 }
 0x240   :  { %511 = verf.f32 %v296_v7 }
 0x249   :  { %v510_v8 = vpop.eup %509 }
 0x24a   :  { %v512_v9 = vpop.eup %511  ;;  %v301_v11 = vadd.f32 1.0, %v510_v8 }
 0x24b   :  { %v300_v13 = vadd.f32 1.0, %v512_v9 }
 0x24c   :  { %v303_v14 = vmul.f32 %v301_v11, %v295_v10 }
 0x24d   :  { %v302_v15 = vmul.f32 %v300_v13, %v294_v12 }
 0x24e   :  { %305 = vst [vmem:[#allocation11 + $0x8] sm:$0xff] %v303_v14 }
 0x24f   :  { %304 = vst [vmem:[#allocation11] sm:$0xff] %v302_v15 }
 0x250   :  { %634 = shalt.err (!%p631_p2)
}
 0x251   :  { %s635_s9 = scalar_lea.hbm %s787_s5, 256 }
 0x252   :  { %p636_p3 = scmp.ne.s32.totalorder %s787_s5, %s635_s9  ;;  %p639_p4 = scmp.lt.u32.totalorder %s635_s9, %s787_s5 }
 0x254   :  { %p641_p5 = pnand %p639_p4, %p636_p3 }
 0x256   :  { %644 = shalt.err (!%p641_p5)
}
 0x257   :  { %317 = dma.vmem_to_hbm [thread:$0]  %s312_s3, 256, %s787_s5, [#allocation4], %s655_s30, %s655_s30, %s656_s6  }
 0x258   :  { %651 = dma.done.wait [#allocation4], 256  }
 0x259   :  { %652 = vsyncadd [#allocation4], 4294967040 }
 0x25a   :  { %321 = vsyncpa [#allocation3], 1 }
 0x25b   :  { %322 = vsyncpa [#allocation6], 1 }
 0x25c   :  { %323 = vsyncpa [#allocation9], 1 }
 0x25d   :  { %324 = vsyncpa [#allocation4], 1 }

</bundles_post_ra>
